<compile_context>
chip_gen: v7x
topology: tpu7x:2x2x1
jax: 0.10.0
libtpu: 0.0.40
codegen_flags: <defaults>
</compile_context>

<pallas_src>
import jax
import jax.numpy as jnp
from jax.experimental import pallas as pl
from jax.experimental.pallas import tpu as pltpu


def _round_up(x, m):
    return (x + m - 1) // m * m


def _vmem_capacity_bytes():
    try:
        return int(pltpu.get_tpu_info().vmem_capacity_bytes)
    except Exception:
        return 64 << 20  # conservative fallback: v7x per-TC physical VMEM


def _is_v5_device():
    try:
        return "v5" in jax.devices()[0].device_kind.lower()
    except Exception:
        return False


def _choose_tile_m(C, M, pm_itemsize, vmem_budget_bytes):
    """Pick the lane tile: as big as possible while (a) the double-buffered
    blocks fit the VMEM budget and (b) >= 2 grid steps remain so v7x's two
    TensorCores can shard the "parallel" axis (no-op on v5e/v6e)."""
    # Double-buffered bytes per lane: pm (C x itemsize) + packed labels/scores
    # (2 x i32) + output (1 x f32).
    per_lane = 2 * (C * pm_itemsize + 2 * 4 + 4)
    tm = vmem_budget_bytes // per_lane
    tm = min(int(tm), 8192)                              # tile-size sweep plateau
    tm = min(tm, _round_up(pl.cdiv(M, 2), 128))          # >= 2 steps when M is modest
    tm = max(128, (tm // 128) * 128)                     # lane-dense multiple of 128
    return tm


def _make_kernel(upcast_before_select):
    def kernel(pm_ref, ls_ref, out_ref):
        """One lane-dense tile of TM masks per grid step.

        pm_ref:  (C, TM)  predicted mask IoU (classes on sublanes, masks on lanes)
        ls_ref:  (2, TM)  row 0: int32 labels; row 1: f32 bbox scores bitcast to i32
        out_ref: (1, TM)  f32 mask_scores = scores * pm[labels[m], m]
        """
        pm = pm_ref[...]
        if upcast_before_select:  # v5e has no native bf16 VPU path
            pm = pm.astype(jnp.float32)
        labels = ls_ref[0:1, :]                                    # (1, TM) i32
        scores = pltpu.bitcast(ls_ref[1:2, :], jnp.float32)        # (1, TM) f32
        # (C, 1) class ids; '==' broadcasts against (1, TM) labels -> (C, TM).
        class_ids = jax.lax.broadcasted_iota(jnp.int32, (pm.shape[0], 1), 0)
        onehot = class_ids == labels
        # Exactly one class survives per mask column -> sublane reduce == gather.
        # Exact in pm's native dtype (at most one nonzero term per column).
        selected = jnp.sum(
            jnp.where(onehot, pm, jnp.zeros((), pm.dtype)), axis=0, keepdims=True
        )                                                          # (1, TM)
        out_ref[...] = scores * selected.astype(jnp.float32)

    return kernel


def maskiou_postprocessor_class_major(pm_cm, labels, bbox_scores, *, tile_m=None):
    """Production entry point (class-major layout; no transpose, no padding).

    pm_cm:       [C, M] predicted mask IoU, class-major (masks on lanes)
    labels:      [M]    int target class per mask
    bbox_scores: [M]    float bbox scores
    returns mask_scores: [M] float32
    """
    C, M = pm_cm.shape
    itemsize = jnp.dtype(pm_cm.dtype).itemsize
    vmem_cap = _vmem_capacity_bytes()
    if tile_m is None:
        tm = _choose_tile_m(C, M, itemsize, vmem_cap // 4)
    else:
        tm = max(128, (min(int(tile_m), _round_up(M, 128)) // 128) * 128)
    num_tiles = pl.cdiv(M, tm)

    # Pack labels (i32) and scores (f32 bitcast to i32) into one (2, M) stream.
    labels_i32 = labels.astype(jnp.int32).reshape(1, M)
    scores_bits = jax.lax.bitcast_convert_type(
        bbox_scores.astype(jnp.float32), jnp.int32
    ).reshape(1, M)
    ls = jnp.concatenate([labels_i32, scores_bits], axis=0)        # (2, M) i32

    kernel = _make_kernel(
        upcast_before_select=(itemsize < 4) and _is_v5_device()
    )

    bytes_accessed = C * M * itemsize + 2 * M * 4 + M * 4
    out = pl.pallas_call(
        kernel,
        out_shape=jax.ShapeDtypeStruct((1, M), jnp.float32),
        grid_spec=pltpu.PrefetchScalarGridSpec(
            num_scalar_prefetch=0,
            grid=(num_tiles,),
            in_specs=[
                pl.BlockSpec((C, tm), lambda i: (0, i)),
                pl.BlockSpec((2, tm), lambda i: (0, i)),
            ],
            out_specs=pl.BlockSpec((1, tm), lambda i: (0, i)),
        ),
        compiler_params=pltpu.CompilerParams(
            dimension_semantics=("parallel",),
            vmem_limit_bytes=int(min(vmem_cap // 2, 100 << 20)),
        ),
        cost_estimate=pl.CostEstimate(
            flops=3 * C * M + M, transcendentals=0, bytes_accessed=bytes_accessed
        ),
    )(pm_cm, ls)
    return out[0]


def maskiou_postprocessor(pred_maskiou, labels, bbox_scores, *, tile_m=None):
    """Interface-compat wrapper matching the PyTorch module's [N, C] layout.

    NOTE: the transpose below re-reads/re-writes the dominant tensor in HBM; in
    production the maskiou head should emit [C, B*N] directly and call
    maskiou_postprocessor_class_major (the demo's primary path).
    """
    B, N, C = pred_maskiou.shape
    M = B * N
    pm_cm = jnp.transpose(pred_maskiou.reshape(M, C))              # (C, M)
    out = maskiou_postprocessor_class_major(
        pm_cm, labels.reshape(M), bbox_scores.reshape(M), tile_m=tile_m
    )
    return out.reshape(B, N)


if __name__ == "__main__":
    key = jax.random.PRNGKey(0)
    B, N, C = 2, 16, 8  # 2 images, 16 masks/boxes each, 8 classes
    M = B * N

    k1, k2, k3 = jax.random.split(key, 3)
    # Class-major pred_maskiou, as the production maskiou head should emit it.
    pm_cm = jax.random.uniform(k1, (C, M), dtype=jnp.float32)
    labels = jax.random.randint(k2, (M,), 0, C, dtype=jnp.int32)
    bbox_scores = jax.random.uniform(k3, (M,), dtype=jnp.float32)

    mask_scores = maskiou_postprocessor_class_major(pm_cm, labels, bbox_scores)
    mask_scores = jax.block_until_ready(mask_scores)

    # Pure-JAX reference: mask_scores[m] = bbox_scores[m] * pm[labels[m], m].
    expected = bbox_scores * pm_cm[labels, jnp.arange(M)]
    assert mask_scores.shape == (M,)
    assert jnp.allclose(mask_scores, expected, atol=1e-6), "class-major mismatch"

    # Interface-compat path ([B, N, C], like the PyTorch module's per-image [N, C]).
    pred_maskiou = jnp.transpose(pm_cm).reshape(B, N, C)
    ms_bn = maskiou_postprocessor(
        pred_maskiou, labels.reshape(B, N), bbox_scores.reshape(B, N)
    )
    ms_bn = jax.block_until_ready(ms_bn)
    assert ms_bn.shape == (B, N)
    assert jnp.allclose(ms_bn, expected.reshape(B, N), atol=1e-6), "wrapper mismatch"

    print("KERNEL_OK")
</pallas_src>

<mosaic_0001>
module attributes {stable_mosaic.version = 11 : i64} {
  func.func @kernel(%arg0: i32, %arg1: memref<8x128xf32, #tpu.memory_space<vmem>>, %arg2: memref<2x128xi32, #tpu.memory_space<vmem>>, %arg3: memref<1x128xf32, #tpu.memory_space<vmem>>) attributes {dimension_semantics = [#tpu.dimension_semantics<parallel>], iteration_bounds = array<i64: 1>, scalar_prefetch = 0 : i64, scratch_operands = 0 : i64, tpu.core_type = #tpu.core_type<tc>, window_params = [{transform_indices = @transform_0, window_bounds = array<i64: 8, 128>}, {transform_indices = @transform_1, window_bounds = array<i64: 2, 128>}, {transform_indices = @transform_2, window_bounds = array<i64: 1, 128>}]} {
    %c0 = arith.constant 0 : index
    %c0_0 = arith.constant 0 : index
    %0 = vector.load %arg1[%c0, %c0_0] : memref<8x128xf32, #tpu.memory_space<vmem>>, vector<8x128xf32>
    %c0_1 = arith.constant 0 : index
    %c0_2 = arith.constant 0 : index
    %1 = vector.load %arg2[%c0_1, %c0_2] : memref<2x128xi32, #tpu.memory_space<vmem>>, vector<1x128xi32>
    %c1 = arith.constant 1 : index
    %c0_3 = arith.constant 0 : index
    %2 = vector.load %arg2[%c1, %c0_3] : memref<2x128xi32, #tpu.memory_space<vmem>>, vector<1x128xi32>
    %3 = tpu.bitcast %2 : vector<1x128xi32> -> vector<1x128xf32>
    %4 = tpu.iota {dimensions = array<i32: 0>} : vector<8x1xi32>
    %5 = vector.broadcast %4 : vector<8x1xi32> to vector<8x128xi32>
    %6 = vector.broadcast %1 : vector<1x128xi32> to vector<8x128xi32>
    %7 = arith.cmpi eq, %5, %6 : vector<8x128xi32>
    %cst = arith.constant 0.000000e+00 : f32
    %8 = vector.broadcast %cst : f32 to vector<8x128xf32>
    %9 = arith.select %7, %0, %8 : vector<8x128xi1>, vector<8x128xf32>
    %cst_4 = arith.constant dense<0.000000e+00> : vector<128xf32>
    %10 = vector.multi_reduction <add>, %9, %cst_4 [0] : vector<8x128xf32> to vector<128xf32>
    %11 = vector.shape_cast %10 : vector<128xf32> to vector<1x128xf32>
    %12 = arith.mulf %3, %11 : vector<1x128xf32>
    %c0_5 = arith.constant 0 : index
    %c0_6 = arith.constant 0 : index
    %13 = vector.load %arg3[%c0_5, %c0_6] : memref<1x128xf32, #tpu.memory_space<vmem>>, vector<1x128xf32>
    tpu.vector_store %arg3[%c0_5, %c0_6], %12 {strides = array<i32>} : memref<1x128xf32, #tpu.memory_space<vmem>>, vector<1x128xf32>,
    return
  }
  func.func @transform_0(%arg0: i32) -> (i32, i32) {
    %c0_i32 = arith.constant 0 : i32
    %c0_i32_0 = arith.constant 0 : i32
    return %c0_i32, %arg0 : i32, i32
  }
  func.func @transform_1(%arg0: i32) -> (i32, i32) {
    %c0_i32 = arith.constant 0 : i32
    %c0_i32_0 = arith.constant 0 : i32
    return %c0_i32, %arg0 : i32, i32
  }
  func.func @transform_2(%arg0: i32) -> (i32, i32) {
    %c0_i32 = arith.constant 0 : i32
    %c0_i32_0 = arith.constant 0 : i32
    return %c0_i32, %arg0 : i32, i32
  }
}

</mosaic_0001>

<bundles_post_ra>
// kernel: tpu_custom_call.1
= control target key start
LH: loop header
LB: loop body
LE: loop exit
PB: predicated region body
PF: predicated region fallthrough
CT: control target
= control target key end

     0   :  { %7 = vsyncpa [#allocation3], 0  ;;  %s157_s0 = inlined_call_operand.hbm [shape: f32[8,32], index: 0, kind: input, shape index: {}]   ;;  %s158_s1 = inlined_call_operand.vmem [shape: s32[2,32], index: 1, kind: input, shape index: {}]   ;;  %s159_s2 = inlined_call_operand.hbm [shape: f32[1,32], index: 2, kind: output, shape index: {}]  }
   0x1   :  { %8 = vsyncpa [#allocation4], 0  ;;  %s110_s9 = smov [#allocation2]   ;;  %s62_s13 = scalar_lea.hbm %s157_s0, 128 }
   0x2   :  { %s15_s10 = sshll.u32 %s110_s9, 4  ;;  %p63_p0 = scmp.ne.s32.totalorder %s157_s0, %s62_s13  ;;  %s16_s10 = int_to_ptr.vmem [resolvable:$true] %s15_s10 }
   0x3   :  { %p66_p1 = scmp.lt.u32.totalorder %s62_s13, %s157_s0 }
   0x5   :  { %p68_p2 = pnand %p66_p1, %p63_p0 }
   0x7   :  { %71 = shalt.err (!%p68_p2)
}
   0x8   :  { %s72_s18 = scalar_lea.vmem %s16_s10, 128  ;;  %p77_p4 = scmp.lt.s32.totalorder %s16_s10, %s16_s10 }
   0x9   :  { %p73_p3 = scmp.ne.s32.totalorder %s16_s10, %s72_s18  ;;  %p78_p5 = scmp.lt.s32.totalorder %s72_s18, %s72_s18 }
   0xb   :  { %p79_p6 = por %p78_p5, %p77_p4 }
   0xd   :  { %p80_p7 = pnand %p79_p6, %p73_p3 }
   0xf   :  { %83 = shalt.err (!%p80_p7)
}
  0x10   :  { %18 = dma.hbm_to_vmem [thread:$0]  %s157_s0, 128, %s16_s10, [#allocation3]  }
  0x11   :  { %106 = dma.done.wait [#allocation3], 128  }
  0x12   :  { %107 = vsyncadd [#allocation3], 4294967168  ;;  %v28_v0 = vlaneseq  ;;  %v24_v2 = vld [vmem:[#allocation2] sm:$0xff]  ;;  %s111_s0 = smov [#allocation5]  }
  0x13   :  { %v59_v3 = vld [vmem:[%s158_s1] ss:$0 sm:$0xff]  ;;  %v26_v10 = vld [vmem:[%s158_s1 + $0x1] sm:$0x1]  ;;  %s50_s25 = sshll.u32 %s111_s0, 4  ;;  %s51_s25 = int_to_ptr.vmem [resolvable:$true] %s50_s25 }
  0x14   :  { %v29_v1 = vshrl.u32 %v28_v0, 7  ;;  %s84_s26 = scalar_lea.vmem %s51_s25, 16  ;;  %s88_s27 = scalar_lea.vmem %s51_s25, 32 }
  0x15   :  { %p85_p8 = scmp.ne.s32.totalorder %s51_s25, %s84_s26  ;;  %p89_p9 = scmp.lt.s32.totalorder %s51_s25, %s51_s25 }
  0x16   :  { %vm34_vm0 = vcmp.eq.s32.totalorder %v29_v1, %v59_v3  ;;  %p90_p10 = scmp.lt.s32.totalorder %s88_s27, %s84_s26 }
  0x17   :  { %v35_v4 = vsel %vm34_vm0, %v24_v2, 0.0 }
  0x18   :  { %v36_v5 = vrot.slane %v35_v4, 4  ;;  %p91_p11 = por %p90_p10, %p89_p9 }
  0x1a   :  { %v37_v6 = vadd.f32 %v36_v5, %v35_v4  ;;  %p92_p12 = pnand %p91_p11, %p85_p8 }
  0x1c   :  { %v38_v7 = vrot.slane %v37_v6, 2 }
  0x1e   :  { %v39_v8 = vadd.f32 %v38_v7, %v37_v6 }
  0x20   :  { %v40_v9 = vrot.slane %v39_v8, 1 }
  0x22   :  { %v41_v11 = vadd.f32 %v40_v9, %v39_v8 }
  0x24   :  { %v42_v12 = vmul.f32 %v41_v11, %v26_v10 }
  0x26   :  { %43 = vst [vmem:[#allocation5] sm:$0x1] %v42_v12 }
  0x27   :  { %95 = shalt.err (!%p92_p12)
}
  0x28   :  { %s96_s30 = scalar_lea.hbm %s159_s2, 16 }
  0x29   :  { %p97_p13 = scmp.ne.s32.totalorder %s159_s2, %s96_s30  ;;  %p100_p0 = scmp.lt.u32.totalorder %s96_s30, %s159_s2 }
  0x2b   :  { %p102_p1 = pnand %p100_p0, %p97_p13 }
  0x2d   :  { %105 = shalt.err (!%p102_p1)
}
  0x2e   :  { %53 = dma.vmem_to_hbm [thread:$0]  %s51_s25, 16, %s159_s2, [#allocation4]  }
  0x2f   :  { %108 = dma.done.wait [#allocation4], 16  }
  0x30   :  { %109 = vsyncadd [#allocation4], 4294967280 }
  0x31   :  { %57 = vsyncpa [#allocation3], 1 }
  0x32   :  { %58 = vsyncpa [#allocation4], 1 }

</bundles_post_ra>
